<compile_context>
chip_gen: v5e
topology: v5e:2x2
jax: 0.10.0
libtpu: 0.0.40
codegen_flags: <defaults>
</compile_context>

<pallas_src>
import functools

import jax
import jax.numpy as jnp
from jax import lax
from jax.experimental import pallas as pl
from jax.experimental.pallas import tpu as pltpu

EPS = 1e-5


def encoder_kernel(x_ref,
                   wqkv_ref, bqkv_ref, wo_ref, bo_ref,
                   g1_ref, be1_ref, g2_ref, be2_ref,
                   w1_ref, bf1_ref, w2_ref, bf2_ref,
                   out_ref, attn_ref,
                   ctx_ref,
                   *, S, H, Dh, Bt):
    """One grid step: Bt batch rows packed into the MXU M dimension (M = Bt*S)."""
    bf16 = jnp.bfloat16
    f32 = jnp.float32
    D = x_ref.shape[-1]

    x = x_ref[...]                                           # (M, D) f32

    # ---- LayerNorm 1 (pre-LN for attention), f32 statistics ----
    mu = jnp.mean(x, axis=-1, keepdims=True)
    var = jnp.mean((x - mu) ** 2, axis=-1, keepdims=True)
    xn = (x - mu) * lax.rsqrt(var + EPS) * g1_ref[...] + be1_ref[...]
    xnb = xn.astype(bf16)

    # ---- fused QKV projection: one lane-dense (M, D) @ (D, 3D) MXU pass ----
    # 1/sqrt(Dh) is already folded into the Q columns of wqkv/bqkv by the wrapper.
    qkv = jnp.dot(xnb, wqkv_ref[...], preferred_element_type=f32) + bqkv_ref[...]   # (M, 3D) f32
    qkvb = qkv.astype(bf16).reshape(Bt, S, 3 * D)            # cast once for all heads

    inv_h = 1.0 / float(H)
    attn_acc = None                                          # (Bt, S, S) f32, stored once at end

    for h in range(H):                                       # static head loop
        qh = qkvb[:, :, h * Dh:(h + 1) * Dh]                 # (Bt, S, Dh) bf16
        kh = qkvb[:, :, D + h * Dh:D + (h + 1) * Dh]
        vh = qkvb[:, :, 2 * D + h * Dh:2 * D + (h + 1) * Dh]

        # scores: batched over the Bt packed batch rows, contracting last dims (no k transpose).
        s = jnp.einsum('bqd,bkd->bqk', qh, kh, preferred_element_type=f32)   # (Bt, S, S)
        s = s - jnp.max(s, axis=-1, keepdims=True)
        p = jnp.exp(s)
        p = p * pl.reciprocal(jnp.sum(p, axis=-1, keepdims=True), approx=True)

        attn_acc = p * inv_h if h == 0 else attn_acc + p * inv_h

        ctx_h = jnp.einsum('bqk,bkd->bqd', p.astype(bf16), vh,
                           preferred_element_type=f32)       # (Bt, S, Dh)
        # concat-heads layout: head h occupies columns [h*Dh, (h+1)*Dh) of the VMEM scratch.
        ctx_ref[:, :, h * Dh:(h + 1) * Dh] = ctx_h

    attn_ref[...] = attn_acc                                 # single store of the mean weights

    # ---- output projection: one (M, D) @ (D, D) matmul over the concat-heads context ----
    ctx = ctx_ref[...].reshape(Bt * S, D).astype(bf16)
    attn_out = jnp.dot(ctx, wo_ref[...], preferred_element_type=f32)
    x1 = x + attn_out + bo_ref[...]                          # residual 1, f32

    # ---- LayerNorm 2 (pre-LN for FFN) ----
    mu2 = jnp.mean(x1, axis=-1, keepdims=True)
    var2 = jnp.mean((x1 - mu2) ** 2, axis=-1, keepdims=True)
    x1n = ((x1 - mu2) * lax.rsqrt(var2 + EPS) * g2_ref[...] + be2_ref[...]).astype(bf16)

    # ---- FFN (bf16 matmuls, f32 accumulation / bias / relu) ----
    h1 = jnp.maximum(
        jnp.dot(x1n, w1_ref[...], preferred_element_type=f32) + bf1_ref[...], 0.0)
    ffn = jnp.dot(h1.astype(bf16), w2_ref[...], preferred_element_type=f32) + bf2_ref[...]

    out_ref[...] = x1 + ffn                                  # residual 2


def _device_kind():
    try:
        return jax.devices()[0].device_kind.lower()
    except Exception:
        return ""


def self_attention_encoder_layer(x, params, num_heads, *, block_b=None):
    B, S, D = x.shape
    F = params["w1"].shape[0]
    H = num_heads
    assert D % H == 0
    Dh = D // H

    kind = _device_kind()
    # Per-chip tuning: MXU M target and VMEM budget.
    row_target = 128 if "v5" in kind else 256                # v5e MXU is 128-wide; v6e/v7x 256
    vmem_limit = (48 if "v7" in kind else 96) * 1024 * 1024  # v7x: 64 MiB physical; else 128 MiB

    # Pack batch rows per grid step to fill the MXU M dimension, but keep >= 2 grid steps when
    # possible so both v7x TensorCores get work (grid axis is "parallel"). Bt must divide B.
    if block_b is None:
        block_b = max(1, min(B, -(-row_target // S)))
        if B >= 2:
            block_b = min(block_b, B // 2)
        while B % block_b:
            block_b -= 1
    Bt = block_b
    assert B % Bt == 0

    f32, bf16 = jnp.float32, jnp.bfloat16
    scale = 1.0 / float(Dh) ** 0.5

    # ---- constant-fold the weight layout in the wrapper ----
    win = params["win"].astype(f32)                          # (3D, D), PyTorch packed Q,K,V
    bin_ = params["bin"].astype(f32)
    col_scale = jnp.concatenate([jnp.full((D,), scale, f32), jnp.ones((2 * D,), f32)])
    wqkv = (win.T * col_scale[None, :]).astype(bf16)         # (D, 3D), scale folded into Q cols
    bqkv = (bin_ * col_scale).reshape(1, 3 * D).astype(f32)
    wo = params["wo"].T.astype(bf16)                         # (D, D): concat-heads @ Wo^T
    bo = params["bo"].reshape(1, D).astype(f32)
    g1 = params["g1"].reshape(1, D).astype(f32)
    be1 = params["be1"].reshape(1, D).astype(f32)
    g2 = params["g2"].reshape(1, D).astype(f32)
    be2 = params["be2"].reshape(1, D).astype(f32)
    w1 = params["w1"].T.astype(bf16)                         # (D, F)
    bf1 = params["bf1"].reshape(1, F).astype(f32)
    w2 = params["w2"].T.astype(bf16)                         # (F, D)
    bf2 = params["bf2"].reshape(1, D).astype(f32)

    weights = [wqkv, bqkv, wo, bo, g1, be1, g2, be2, w1, bf1, w2, bf2]

    xf = x.reshape(B * S, D).astype(f32)                     # flatten batch rows (row tiling)

    kernel = functools.partial(encoder_kernel, S=S, H=H, Dh=Dh, Bt=Bt)

    # Weights/biases are resident in VMEM for the entire grid: one copy, no per-step DMA,
    # no double buffering (replaces the previous Buffered(1)/bare-except fallback).
    weight_spec = pl.BlockSpec(memory_space=pltpu.MemorySpace.VMEM)

    call = pl.pallas_call(
        kernel,
        out_shape=(jax.ShapeDtypeStruct((B * S, D), f32),
                   jax.ShapeDtypeStruct((B, S, S), f32)),
        grid_spec=pltpu.PrefetchScalarGridSpec(
            num_scalar_prefetch=0,
            grid=(B // Bt,),
            in_specs=[pl.BlockSpec((Bt * S, D), lambda i: (i, 0))]
                     + [weight_spec] * len(weights),
            out_specs=[pl.BlockSpec((Bt * S, D), lambda i: (i, 0)),
                       pl.BlockSpec((Bt, S, S), lambda i: (i, 0, 0))],
            scratch_shapes=[pltpu.VMEM((Bt, S, D), f32)]),   # concat-heads context scratch
        compiler_params=pltpu.CompilerParams(
            dimension_semantics=("parallel",),
            vmem_limit_bytes=vmem_limit),
    )
    out_flat, attn = call(xf, *weights)
    return out_flat.reshape(B, S, D), attn


# ---------------- pure-JAX reference (f32) for verification ----------------
def reference(x, params, num_heads):
    B, S, D = x.shape
    H = num_heads
    Dh = D // H

    def ln(t, g, b):
        mu = t.mean(-1, keepdims=True)
        var = ((t - mu) ** 2).mean(-1, keepdims=True)
        return (t - mu) / jnp.sqrt(var + EPS) * g + b

    xn = ln(x, params["g1"], params["be1"])
    qkv = xn @ params["win"].T + params["bin"]
    q, k, v = jnp.split(qkv, 3, axis=-1)
    qh = q.reshape(B, S, H, Dh).transpose(0, 2, 1, 3)
    kh = k.reshape(B, S, H, Dh).transpose(0, 2, 1, 3)
    vh = v.reshape(B, S, H, Dh).transpose(0, 2, 1, 3)
    scores = jnp.einsum("bhqd,bhkd->bhqk", qh / jnp.sqrt(Dh), kh)
    p = jax.nn.softmax(scores, axis=-1)
    ctx = jnp.einsum("bhqk,bhkd->bhqd", p, vh).transpose(0, 2, 1, 3).reshape(B, S, D)
    attn_out = ctx @ params["wo"].T + params["bo"]
    x1 = x + attn_out
    x1n = ln(x1, params["g2"], params["be2"])
    h1 = jax.nn.relu(x1n @ params["w1"].T + params["bf1"])
    out = x1 + h1 @ params["w2"].T + params["bf2"]
    return out, p.mean(axis=1)


if __name__ == "__main__":
    d_model, num_heads, d_ff = 32, 4, 64
    batch, seq = 2, 8

    key = jax.random.PRNGKey(0)
    ks = jax.random.split(key, 9)
    params = {
        "win": 0.1 * jax.random.normal(ks[0], (3 * d_model, d_model), jnp.float32),
        "bin": 0.02 * jax.random.normal(ks[1], (3 * d_model,), jnp.float32),
        "wo": 0.1 * jax.random.normal(ks[2], (d_model, d_model), jnp.float32),
        "bo": 0.02 * jax.random.normal(ks[3], (d_model,), jnp.float32),
        "g1": jnp.ones((d_model,), jnp.float32),
        "be1": jnp.zeros((d_model,), jnp.float32),
        "g2": jnp.ones((d_model,), jnp.float32),
        "be2": jnp.zeros((d_model,), jnp.float32),
        "w1": 0.1 * jax.random.normal(ks[4], (d_ff, d_model), jnp.float32),
        "bf1": 0.02 * jax.random.normal(ks[5], (d_ff,), jnp.float32),
        "w2": 0.1 * jax.random.normal(ks[6], (d_model, d_ff), jnp.float32),
        "bf2": 0.02 * jax.random.normal(ks[7], (d_model,), jnp.float32),
    }
    x = jax.random.normal(ks[8], (batch, seq, d_model), jnp.float32)

    out, attn = self_attention_encoder_layer(x, params, num_heads)
    out, attn = jax.block_until_ready((out, attn))

    ref_out, ref_attn = reference(x, params, num_heads)
    # bf16 MXU operands with f32 accumulation (LayerNorm/softmax in f32) -> tolerances account
    # for intentional bf16 rounding of matmul operands and the approx EUP reciprocal in softmax.
    assert jnp.allclose(out, ref_out, atol=1e-2, rtol=1e-2), "output mismatch"
    assert jnp.allclose(attn, ref_attn, atol=5e-3, rtol=5e-3), "attn weights mismatch"

    print("KERNEL_OK")
</pallas_src>

<mosaic_0001>
module attributes {stable_mosaic.version = 11 : i64} {
  func.func @encoder_kernel(%arg0: i32, %arg1: memref<8x32xf32, #tpu.memory_space<vmem>>, %arg2: memref<32x96xbf16, #tpu.memory_space<vmem>>, %arg3: memref<1x96xf32, #tpu.memory_space<vmem>>, %arg4: memref<32x32xbf16, #tpu.memory_space<vmem>>, %arg5: memref<1x32xf32, #tpu.memory_space<vmem>>, %arg6: memref<1x32xf32, #tpu.memory_space<vmem>>, %arg7: memref<1x32xf32, #tpu.memory_space<vmem>>, %arg8: memref<1x32xf32, #tpu.memory_space<vmem>>, %arg9: memref<1x32xf32, #tpu.memory_space<vmem>>, %arg10: memref<32x64xbf16, #tpu.memory_space<vmem>>, %arg11: memref<1x64xf32, #tpu.memory_space<vmem>>, %arg12: memref<64x32xbf16, #tpu.memory_space<vmem>>, %arg13: memref<1x32xf32, #tpu.memory_space<vmem>>, %arg14: memref<8x32xf32, #tpu.memory_space<vmem>>, %arg15: memref<1x8x8xf32, #tpu.memory_space<vmem>>, %arg16: memref<1x8x32xf32, #tpu.memory_space<vmem>>) attributes {dimension_semantics = [#tpu.dimension_semantics<parallel>], iteration_bounds = array<i64: 2>, scalar_prefetch = 0 : i64, scratch_operands = 1 : i64, tpu.core_type = #tpu.core_type<tc>, window_params = [{transform_indices = @transform_0, window_bounds = array<i64: 8, 32>}, {pipeline_mode = #tpu.pipeline_mode<synchronous>, transform_indices = @transform_1, window_bounds = array<i64: 32, 96>}, {pipeline_mode = #tpu.pipeline_mode<synchronous>, transform_indices = @transform_2, window_bounds = array<i64: 1, 96>}, {pipeline_mode = #tpu.pipeline_mode<synchronous>, transform_indices = @transform_3, window_bounds = array<i64: 32, 32>}, {pipeline_mode = #tpu.pipeline_mode<synchronous>, transform_indices = @transform_4, window_bounds = array<i64: 1, 32>}, {pipeline_mode = #tpu.pipeline_mode<synchronous>, transform_indices = @transform_5, window_bounds = array<i64: 1, 32>}, {pipeline_mode = #tpu.pipeline_mode<synchronous>, transform_indices = @transform_6, window_bounds = array<i64: 1, 32>}, {pipeline_mode = #tpu.pipeline_mode<synchronous>, transform_indices = @transform_7, window_bounds = array<i64: 1, 32>}, {pipeline_mode = #tpu.pipeline_mode<synchronous>, transform_indices = @transform_8, window_bounds = array<i64: 1, 32>}, {pipeline_mode = #tpu.pipeline_mode<synchronous>, transform_indices = @transform_9, window_bounds = array<i64: 32, 64>}, {pipeline_mode = #tpu.pipeline_mode<synchronous>, transform_indices = @transform_10, window_bounds = array<i64: 1, 64>}, {pipeline_mode = #tpu.pipeline_mode<synchronous>, transform_indices = @transform_11, window_bounds = array<i64: 64, 32>}, {pipeline_mode = #tpu.pipeline_mode<synchronous>, transform_indices = @transform_12, window_bounds = array<i64: 1, 32>}, {transform_indices = @transform_13, window_bounds = array<i64: 8, 32>}, {transform_indices = @transform_14, window_bounds = array<i64: 1, 8, 8>}]} {
    %c0 = arith.constant 0 : index
    %c0_0 = arith.constant 0 : index
    %0 = vector.load %arg1[%c0, %c0_0] : memref<8x32xf32, #tpu.memory_space<vmem>>, vector<8x32xf32>
    %cst = arith.constant dense<0.000000e+00> : vector<8xf32>
    %1 = vector.multi_reduction <add>, %0, %cst [1] : vector<8x32xf32> to vector<8xf32>
    %2 = vector.shape_cast %1 : vector<8xf32> to vector<8x1xf32>
    %cst_1 = arith.constant 3.200000e+01 : f32
    %3 = vector.broadcast %cst_1 : f32 to vector<8x1xf32>
    %4 = arith.divf %2, %3 : vector<8x1xf32>
    %5 = vector.broadcast %4 : vector<8x1xf32> to vector<8x32xf32>
    %6 = arith.subf %0, %5 : vector<8x32xf32>
    %7 = arith.mulf %6, %6 : vector<8x32xf32>
    %cst_2 = arith.constant dense<0.000000e+00> : vector<8xf32>
    %8 = vector.multi_reduction <add>, %7, %cst_2 [1] : vector<8x32xf32> to vector<8xf32>
    %9 = vector.shape_cast %8 : vector<8xf32> to vector<8x1xf32>
    %cst_3 = arith.constant 3.200000e+01 : f32
    %10 = vector.broadcast %cst_3 : f32 to vector<8x1xf32>
    %11 = arith.divf %9, %10 : vector<8x1xf32>
    %12 = vector.broadcast %4 : vector<8x1xf32> to vector<8x32xf32>
    %13 = arith.subf %0, %12 : vector<8x32xf32>
    %cst_4 = arith.constant 9.99999974E-6 : f32
    %14 = vector.broadcast %cst_4 : f32 to vector<8x1xf32>
    %15 = arith.addf %11, %14 : vector<8x1xf32>
    %16 = math.rsqrt %15 : vector<8x1xf32>
    %17 = vector.broadcast %16 : vector<8x1xf32> to vector<8x32xf32>
    %18 = arith.mulf %13, %17 : vector<8x32xf32>
    %c0_5 = arith.constant 0 : index
    %c0_6 = arith.constant 0 : index
    %19 = vector.load %arg6[%c0_5, %c0_6] : memref<1x32xf32, #tpu.memory_space<vmem>>, vector<1x32xf32>
    %20 = vector.broadcast %19 : vector<1x32xf32> to vector<8x32xf32>
    %21 = arith.mulf %18, %20 : vector<8x32xf32>
    %c0_7 = arith.constant 0 : index
    %c0_8 = arith.constant 0 : index
    %22 = vector.load %arg7[%c0_7, %c0_8] : memref<1x32xf32, #tpu.memory_space<vmem>>, vector<1x32xf32>
    %23 = vector.broadcast %22 : vector<1x32xf32> to vector<8x32xf32>
    %24 = arith.addf %21, %23 : vector<8x32xf32>
    %25 = arith.truncf %24 : vector<8x32xf32> to vector<8x32xbf16>
    %c0_9 = arith.constant 0 : index
    %c0_10 = arith.constant 0 : index
    %26 = vector.load %arg2[%c0_9, %c0_10] : memref<32x96xbf16, #tpu.memory_space<vmem>>, vector<32x96xbf16>
    %cst_11 = arith.constant dense<0.000000e+00> : vector<8x96xf32>
    %27 = tpu.matmul %25, %26, %cst_11 {dimension_numbers = #tpu.dot_dimension_numbers<[1], [0], [0], [1], [0, 0, 1, 1], [], []>} : vector<8x32xbf16>, vector<32x96xbf16>, vector<8x96xf32> -> vector<8x96xf32>
    %c0_12 = arith.constant 0 : index
    %c0_13 = arith.constant 0 : index
    %28 = vector.load %arg3[%c0_12, %c0_13] : memref<1x96xf32, #tpu.memory_space<vmem>>, vector<1x96xf32>
    %29 = vector.broadcast %28 : vector<1x96xf32> to vector<8x96xf32>
    %30 = arith.addf %27, %29 : vector<8x96xf32>
    %31 = arith.truncf %30 : vector<8x96xf32> to vector<8x96xbf16>
    %32 = vector.shape_cast %31 : vector<8x96xbf16> to vector<1x8x96xbf16>
    %33 = vector.extract_strided_slice %32 {offsets = [0, 0, 0], sizes = [1, 8, 8], strides = [1, 1, 1]} : vector<1x8x96xbf16> to vector<1x8x8xbf16>
    %34 = vector.extract_strided_slice %32 {offsets = [0, 0, 32], sizes = [1, 8, 8], strides = [1, 1, 1]} : vector<1x8x96xbf16> to vector<1x8x8xbf16>
    %35 = vector.extract_strided_slice %32 {offsets = [0, 0, 64], sizes = [1, 8, 8], strides = [1, 1, 1]} : vector<1x8x96xbf16> to vector<1x8x8xbf16>
    "tpu.trace_start"() <{level = 10 : i32, message = "bqd,bkd->bqk"}> : () -> ()
    %cst_14 = arith.constant dense<0.000000e+00> : vector<1x8x8xf32>
    %36 = tpu.matmul %33, %34, %cst_14 {dimension_numbers = #tpu.dot_dimension_numbers<[2], [2], [1], [1], [0, 0, 0, 1, 1, 1], [0], [0]>} : vector<1x8x8xbf16>, vector<1x8x8xbf16>, vector<1x8x8xf32> -> vector<1x8x8xf32>
    "tpu.trace_stop"() : () -> ()
    %cst_15 = arith.constant dense<0xFF800000> : vector<1x8xf32>
    %37 = vector.multi_reduction <maximumf>, %36, %cst_15 [2] : vector<1x8x8xf32> to vector<1x8xf32>
    %38 = vector.shape_cast %37 : vector<1x8xf32> to vector<1x8x1xf32>
    %39 = vector.broadcast %38 : vector<1x8x1xf32> to vector<1x8x8xf32>
    %40 = arith.subf %36, %39 : vector<1x8x8xf32>
    %41 = math.exp %40 : vector<1x8x8xf32>
    %cst_16 = arith.constant dense<0.000000e+00> : vector<1x8xf32>
    %42 = vector.multi_reduction <add>, %41, %cst_16 [2] : vector<1x8x8xf32> to vector<1x8xf32>
    %43 = vector.shape_cast %42 : vector<1x8xf32> to vector<1x8x1xf32>
    %44 = tpu.reciprocal %43 {approx = true} : vector<1x8x1xf32> -> vector<1x8x1xf32>
    %45 = vector.broadcast %44 : vector<1x8x1xf32> to vector<1x8x8xf32>
    %46 = arith.mulf %41, %45 : vector<1x8x8xf32>
    %cst_17 = arith.constant 2.500000e-01 : f32
    %47 = vector.broadcast %cst_17 : f32 to vector<1x8x8xf32>
    %48 = arith.mulf %46, %47 : vector<1x8x8xf32>
    %49 = arith.truncf %46 : vector<1x8x8xf32> to vector<1x8x8xbf16>
    "tpu.trace_start"() <{level = 10 : i32, message = "bqk,bkd->bqd"}> : () -> ()
    %cst_18 = arith.constant dense<0.000000e+00> : vector<1x8x8xf32>
    %50 = tpu.matmul %49, %35, %cst_18 {dimension_numbers = #tpu.dot_dimension_numbers<[2], [1], [1], [2], [0, 0, 0, 1, 1, 2], [0], [0]>} : vector<1x8x8xbf16>, vector<1x8x8xbf16>, vector<1x8x8xf32> -> vector<1x8x8xf32>
    "tpu.trace_stop"() : () -> ()
    %c0_19 = arith.constant 0 : index
    %c0_20 = arith.constant 0 : index
    %c0_21 = arith.constant 0 : index
    %51 = vector.load %arg16[%c0_19, %c0_20, %c0_21] : memref<1x8x32xf32, #tpu.memory_space<vmem>>, vector<1x8x8xf32>
    tpu.vector_store %arg16[%c0_19, %c0_20, %c0_21], %50 {strides = array<i32>} : memref<1x8x32xf32, #tpu.memory_space<vmem>>, vector<1x8x8xf32>,
    %52 = vector.extract_strided_slice %32 {offsets = [0, 0, 8], sizes = [1, 8, 8], strides = [1, 1, 1]} : vector<1x8x96xbf16> to vector<1x8x8xbf16>
    %53 = vector.extract_strided_slice %32 {offsets = [0, 0, 40], sizes = [1, 8, 8], strides = [1, 1, 1]} : vector<1x8x96xbf16> to vector<1x8x8xbf16>
    %54 = vector.extract_strided_slice %32 {offsets = [0, 0, 72], sizes = [1, 8, 8], strides = [1, 1, 1]} : vector<1x8x96xbf16> to vector<1x8x8xbf16>
    "tpu.trace_start"() <{level = 10 : i32, message = "bqd,bkd->bqk"}> : () -> ()
    %cst_22 = arith.constant dense<0.000000e+00> : vector<1x8x8xf32>
    %55 = tpu.matmul %52, %53, %cst_22 {dimension_numbers = #tpu.dot_dimension_numbers<[2], [2], [1], [1], [0, 0, 0, 1, 1, 1], [0], [0]>} : vector<1x8x8xbf16>, vector<1x8x8xbf16>, vector<1x8x8xf32> -> vector<1x8x8xf32>
    "tpu.trace_stop"() : () -> ()
    %cst_23 = arith.constant dense<0xFF800000> : vector<1x8xf32>
    %56 = vector.multi_reduction <maximumf>, %55, %cst_23 [2] : vector<1x8x8xf32> to vector<1x8xf32>
    %57 = vector.shape_cast %56 : vector<1x8xf32> to vector<1x8x1xf32>
    %58 = vector.broadcast %57 : vector<1x8x1xf32> to vector<1x8x8xf32>
    %59 = arith.subf %55, %58 : vector<1x8x8xf32>
    %60 = math.exp %59 : vector<1x8x8xf32>
    %cst_24 = arith.constant dense<0.000000e+00> : vector<1x8xf32>
    %61 = vector.multi_reduction <add>, %60, %cst_24 [2] : vector<1x8x8xf32> to vector<1x8xf32>
    %62 = vector.shape_cast %61 : vector<1x8xf32> to vector<1x8x1xf32>
    %63 = tpu.reciprocal %62 {approx = true} : vector<1x8x1xf32> -> vector<1x8x1xf32>
    %64 = vector.broadcast %63 : vector<1x8x1xf32> to vector<1x8x8xf32>
    %65 = arith.mulf %60, %64 : vector<1x8x8xf32>
    %cst_25 = arith.constant 2.500000e-01 : f32
    %66 = vector.broadcast %cst_25 : f32 to vector<1x8x8xf32>
    %67 = arith.mulf %65, %66 : vector<1x8x8xf32>
    %68 = arith.addf %48, %67 : vector<1x8x8xf32>
    %69 = arith.truncf %65 : vector<1x8x8xf32> to vector<1x8x8xbf16>
    "tpu.trace_start"() <{level = 10 : i32, message = "bqk,bkd->bqd"}> : () -> ()
    %cst_26 = arith.constant dense<0.000000e+00> : vector<1x8x8xf32>
    %70 = tpu.matmul %69, %54, %cst_26 {dimension_numbers = #tpu.dot_dimension_numbers<[2], [1], [1], [2], [0, 0, 0, 1, 1, 2], [0], [0]>} : vector<1x8x8xbf16>, vector<1x8x8xbf16>, vector<1x8x8xf32> -> vector<1x8x8xf32>
    "tpu.trace_stop"() : () -> ()
    %c0_27 = arith.constant 0 : index
    %c0_28 = arith.constant 0 : index
    %c8 = arith.constant 8 : index
    %71 = vector.load %arg16[%c0_27, %c0_28, %c8] : memref<1x8x32xf32, #tpu.memory_space<vmem>>, vector<1x8x8xf32>
    tpu.vector_store %arg16[%c0_27, %c0_28, %c8], %70 {strides = array<i32>} : memref<1x8x32xf32, #tpu.memory_space<vmem>>, vector<1x8x8xf32>,
    %72 = vector.extract_strided_slice %32 {offsets = [0, 0, 16], sizes = [1, 8, 8], strides = [1, 1, 1]} : vector<1x8x96xbf16> to vector<1x8x8xbf16>
    %73 = vector.extract_strided_slice %32 {offsets = [0, 0, 48], sizes = [1, 8, 8], strides = [1, 1, 1]} : vector<1x8x96xbf16> to vector<1x8x8xbf16>
    %74 = vector.extract_strided_slice %32 {offsets = [0, 0, 80], sizes = [1, 8, 8], strides = [1, 1, 1]} : vector<1x8x96xbf16> to vector<1x8x8xbf16>
    "tpu.trace_start"() <{level = 10 : i32, message = "bqd,bkd->bqk"}> : () -> ()
    %cst_29 = arith.constant dense<0.000000e+00> : vector<1x8x8xf32>
    %75 = tpu.matmul %72, %73, %cst_29 {dimension_numbers = #tpu.dot_dimension_numbers<[2], [2], [1], [1], [0, 0, 0, 1, 1, 1], [0], [0]>} : vector<1x8x8xbf16>, vector<1x8x8xbf16>, vector<1x8x8xf32> -> vector<1x8x8xf32>
    "tpu.trace_stop"() : () -> ()
    %cst_30 = arith.constant dense<0xFF800000> : vector<1x8xf32>
    %76 = vector.multi_reduction <maximumf>, %75, %cst_30 [2] : vector<1x8x8xf32> to vector<1x8xf32>
    %77 = vector.shape_cast %76 : vector<1x8xf32> to vector<1x8x1xf32>
    %78 = vector.broadcast %77 : vector<1x8x1xf32> to vector<1x8x8xf32>
    %79 = arith.subf %75, %78 : vector<1x8x8xf32>
    %80 = math.exp %79 : vector<1x8x8xf32>
    %cst_31 = arith.constant dense<0.000000e+00> : vector<1x8xf32>
    %81 = vector.multi_reduction <add>, %80, %cst_31 [2] : vector<1x8x8xf32> to vector<1x8xf32>
    %82 = vector.shape_cast %81 : vector<1x8xf32> to vector<1x8x1xf32>
    %83 = tpu.reciprocal %82 {approx = true} : vector<1x8x1xf32> -> vector<1x8x1xf32>
    %84 = vector.broadcast %83 : vector<1x8x1xf32> to vector<1x8x8xf32>
    %85 = arith.mulf %80, %84 : vector<1x8x8xf32>
    %cst_32 = arith.constant 2.500000e-01 : f32
    %86 = vector.broadcast %cst_32 : f32 to vector<1x8x8xf32>
    %87 = arith.mulf %85, %86 : vector<1x8x8xf32>
    %88 = arith.addf %68, %87 : vector<1x8x8xf32>
    %89 = arith.truncf %85 : vector<1x8x8xf32> to vector<1x8x8xbf16>
    "tpu.trace_start"() <{level = 10 : i32, message = "bqk,bkd->bqd"}> : () -> ()
    %cst_33 = arith.constant dense<0.000000e+00> : vector<1x8x8xf32>
    %90 = tpu.matmul %89, %74, %cst_33 {dimension_numbers = #tpu.dot_dimension_numbers<[2], [1], [1], [2], [0, 0, 0, 1, 1, 2], [0], [0]>} : vector<1x8x8xbf16>, vector<1x8x8xbf16>, vector<1x8x8xf32> -> vector<1x8x8xf32>
    "tpu.trace_stop"() : () -> ()
    %c0_34 = arith.constant 0 : index
    %c0_35 = arith.constant 0 : index
    %c16 = arith.constant 16 : index
    %91 = vector.load %arg16[%c0_34, %c0_35, %c16] : memref<1x8x32xf32, #tpu.memory_space<vmem>>, vector<1x8x8xf32>
    tpu.vector_store %arg16[%c0_34, %c0_35, %c16], %90 {strides = array<i32>} : memref<1x8x32xf32, #tpu.memory_space<vmem>>, vector<1x8x8xf32>,
    %92 = vector.extract_strided_slice %32 {offsets = [0, 0, 24], sizes = [1, 8, 8], strides = [1, 1, 1]} : vector<1x8x96xbf16> to vector<1x8x8xbf16>
    %93 = vector.extract_strided_slice %32 {offsets = [0, 0, 56], sizes = [1, 8, 8], strides = [1, 1, 1]} : vector<1x8x96xbf16> to vector<1x8x8xbf16>
    %94 = vector.extract_strided_slice %32 {offsets = [0, 0, 88], sizes = [1, 8, 8], strides = [1, 1, 1]} : vector<1x8x96xbf16> to vector<1x8x8xbf16>
    "tpu.trace_start"() <{level = 10 : i32, message = "bqd,bkd->bqk"}> : () -> ()
    %cst_36 = arith.constant dense<0.000000e+00> : vector<1x8x8xf32>
    %95 = tpu.matmul %92, %93, %cst_36 {dimension_numbers = #tpu.dot_dimension_numbers<[2], [2], [1], [1], [0, 0, 0, 1, 1, 1], [0], [0]>} : vector<1x8x8xbf16>, vector<1x8x8xbf16>, vector<1x8x8xf32> -> vector<1x8x8xf32>
    "tpu.trace_stop"() : () -> ()
    %cst_37 = arith.constant dense<0xFF800000> : vector<1x8xf32>
    %96 = vector.multi_reduction <maximumf>, %95, %cst_37 [2] : vector<1x8x8xf32> to vector<1x8xf32>
    %97 = vector.shape_cast %96 : vector<1x8xf32> to vector<1x8x1xf32>
    %98 = vector.broadcast %97 : vector<1x8x1xf32> to vector<1x8x8xf32>
    %99 = arith.subf %95, %98 : vector<1x8x8xf32>
    %100 = math.exp %99 : vector<1x8x8xf32>
    %cst_38 = arith.constant dense<0.000000e+00> : vector<1x8xf32>
    %101 = vector.multi_reduction <add>, %100, %cst_38 [2] : vector<1x8x8xf32> to vector<1x8xf32>
    %102 = vector.shape_cast %101 : vector<1x8xf32> to vector<1x8x1xf32>
    %103 = tpu.reciprocal %102 {approx = true} : vector<1x8x1xf32> -> vector<1x8x1xf32>
    %104 = vector.broadcast %103 : vector<1x8x1xf32> to vector<1x8x8xf32>
    %105 = arith.mulf %100, %104 : vector<1x8x8xf32>
    %cst_39 = arith.constant 2.500000e-01 : f32
    %106 = vector.broadcast %cst_39 : f32 to vector<1x8x8xf32>
    %107 = arith.mulf %105, %106 : vector<1x8x8xf32>
    %108 = arith.addf %88, %107 : vector<1x8x8xf32>
    %109 = arith.truncf %105 : vector<1x8x8xf32> to vector<1x8x8xbf16>
    "tpu.trace_start"() <{level = 10 : i32, message = "bqk,bkd->bqd"}> : () -> ()
    %cst_40 = arith.constant dense<0.000000e+00> : vector<1x8x8xf32>
    %110 = tpu.matmul %109, %94, %cst_40 {dimension_numbers = #tpu.dot_dimension_numbers<[2], [1], [1], [2], [0, 0, 0, 1, 1, 2], [0], [0]>} : vector<1x8x8xbf16>, vector<1x8x8xbf16>, vector<1x8x8xf32> -> vector<1x8x8xf32>
    "tpu.trace_stop"() : () -> ()
    %c0_41 = arith.constant 0 : index
    %c0_42 = arith.constant 0 : index
    %c24 = arith.constant 24 : index
    %111 = vector.load %arg16[%c0_41, %c0_42, %c24] : memref<1x8x32xf32, #tpu.memory_space<vmem>>, vector<1x8x8xf32>
    tpu.vector_store %arg16[%c0_41, %c0_42, %c24], %110 {strides = array<i32>} : memref<1x8x32xf32, #tpu.memory_space<vmem>>, vector<1x8x8xf32>,
    %c0_43 = arith.constant 0 : index
    %c0_44 = arith.constant 0 : index
    %c0_45 = arith.constant 0 : index
    %112 = vector.load %arg15[%c0_43, %c0_44, %c0_45] : memref<1x8x8xf32, #tpu.memory_space<vmem>>, vector<1x8x8xf32>
    tpu.vector_store %arg15[%c0_43, %c0_44, %c0_45], %108 {strides = array<i32>} : memref<1x8x8xf32, #tpu.memory_space<vmem>>, vector<1x8x8xf32>,
    %c0_46 = arith.constant 0 : index
    %c0_47 = arith.constant 0 : index
    %c0_48 = arith.constant 0 : index
    %113 = vector.load %arg16[%c0_46, %c0_47, %c0_48] : memref<1x8x32xf32, #tpu.memory_space<vmem>>, vector<1x8x32xf32>
    %114 = vector.shape_cast %113 : vector<1x8x32xf32> to vector<8x32xf32>
    %115 = arith.truncf %114 : vector<8x32xf32> to vector<8x32xbf16>
    %c0_49 = arith.constant 0 : index
    %c0_50 = arith.constant 0 : index
    %116 = vector.load %arg4[%c0_49, %c0_50] : memref<32x32xbf16, #tpu.memory_space<vmem>>, vector<32x32xbf16>
    %cst_51 = arith.constant dense<0.000000e+00> : vector<8x32xf32>
    %117 = tpu.matmul %115, %116, %cst_51 {dimension_numbers = #tpu.dot_dimension_numbers<[1], [0], [0], [1], [0, 0, 1, 1], [], []>} : vector<8x32xbf16>, vector<32x32xbf16>, vector<8x32xf32> -> vector<8x32xf32>
    %118 = arith.addf %0, %117 : vector<8x32xf32>
    %c0_52 = arith.constant 0 : index
    %c0_53 = arith.constant 0 : index
    %119 = vector.load %arg5[%c0_52, %c0_53] : memref<1x32xf32, #tpu.memory_space<vmem>>, vector<1x32xf32>
    %120 = vector.broadcast %119 : vector<1x32xf32> to vector<8x32xf32>
    %121 = arith.addf %118, %120 : vector<8x32xf32>
    %cst_54 = arith.constant dense<0.000000e+00> : vector<8xf32>
    %122 = vector.multi_reduction <add>, %121, %cst_54 [1] : vector<8x32xf32> to vector<8xf32>
    %123 = vector.shape_cast %122 : vector<8xf32> to vector<8x1xf32>
    %cst_55 = arith.constant 3.200000e+01 : f32
    %124 = vector.broadcast %cst_55 : f32 to vector<8x1xf32>
    %125 = arith.divf %123, %124 : vector<8x1xf32>
    %126 = vector.broadcast %125 : vector<8x1xf32> to vector<8x32xf32>
    %127 = arith.subf %121, %126 : vector<8x32xf32>
    %128 = arith.mulf %127, %127 : vector<8x32xf32>
    %cst_56 = arith.constant dense<0.000000e+00> : vector<8xf32>
    %129 = vector.multi_reduction <add>, %128, %cst_56 [1] : vector<8x32xf32> to vector<8xf32>
    %130 = vector.shape_cast %129 : vector<8xf32> to vector<8x1xf32>
    %cst_57 = arith.constant 3.200000e+01 : f32
    %131 = vector.broadcast %cst_57 : f32 to vector<8x1xf32>
    %132 = arith.divf %130, %131 : vector<8x1xf32>
    %133 = vector.broadcast %125 : vector<8x1xf32> to vector<8x32xf32>
    %134 = arith.subf %121, %133 : vector<8x32xf32>
    %cst_58 = arith.constant 9.99999974E-6 : f32
    %135 = vector.broadcast %cst_58 : f32 to vector<8x1xf32>
    %136 = arith.addf %132, %135 : vector<8x1xf32>
    %137 = math.rsqrt %136 : vector<8x1xf32>
    %138 = vector.broadcast %137 : vector<8x1xf32> to vector<8x32xf32>
    %139 = arith.mulf %134, %138 : vector<8x32xf32>
    %c0_59 = arith.constant 0 : index
    %c0_60 = arith.constant 0 : index
    %140 = vector.load %arg8[%c0_59, %c0_60] : memref<1x32xf32, #tpu.memory_space<vmem>>, vector<1x32xf32>
    %141 = vector.broadcast %140 : vector<1x32xf32> to vector<8x32xf32>
    %142 = arith.mulf %139, %141 : vector<8x32xf32>
    %c0_61 = arith.constant 0 : index
    %c0_62 = arith.constant 0 : index
    %143 = vector.load %arg9[%c0_61, %c0_62] : memref<1x32xf32, #tpu.memory_space<vmem>>, vector<1x32xf32>
    %144 = vector.broadcast %143 : vector<1x32xf32> to vector<8x32xf32>
    %145 = arith.addf %142, %144 : vector<8x32xf32>
    %146 = arith.truncf %145 : vector<8x32xf32> to vector<8x32xbf16>
    %c0_63 = arith.constant 0 : index
    %c0_64 = arith.constant 0 : index
    %147 = vector.load %arg10[%c0_63, %c0_64] : memref<32x64xbf16, #tpu.memory_space<vmem>>, vector<32x64xbf16>
    %cst_65 = arith.constant dense<0.000000e+00> : vector<8x64xf32>
    %148 = tpu.matmul %146, %147, %cst_65 {dimension_numbers = #tpu.dot_dimension_numbers<[1], [0], [0], [1], [0, 0, 1, 1], [], []>} : vector<8x32xbf16>, vector<32x64xbf16>, vector<8x64xf32> -> vector<8x64xf32>
    %c0_66 = arith.constant 0 : index
    %c0_67 = arith.constant 0 : index
    %149 = vector.load %arg11[%c0_66, %c0_67] : memref<1x64xf32, #tpu.memory_space<vmem>>, vector<1x64xf32>
    %150 = vector.broadcast %149 : vector<1x64xf32> to vector<8x64xf32>
    %151 = arith.addf %148, %150 : vector<8x64xf32>
    %cst_68 = arith.constant 0.000000e+00 : f32
    %152 = vector.broadcast %cst_68 : f32 to vector<8x64xf32>
    %153 = arith.maximumf %151, %152 : vector<8x64xf32>
    %154 = arith.truncf %153 : vector<8x64xf32> to vector<8x64xbf16>
    %c0_69 = arith.constant 0 : index
    %c0_70 = arith.constant 0 : index
    %155 = vector.load %arg12[%c0_69, %c0_70] : memref<64x32xbf16, #tpu.memory_space<vmem>>, vector<64x32xbf16>
    %cst_71 = arith.constant dense<0.000000e+00> : vector<8x32xf32>
    %156 = tpu.matmul %154, %155, %cst_71 {dimension_numbers = #tpu.dot_dimension_numbers<[1], [0], [0], [1], [0, 0, 1, 1], [], []>} : vector<8x64xbf16>, vector<64x32xbf16>, vector<8x32xf32> -> vector<8x32xf32>
    %c0_72 = arith.constant 0 : index
    %c0_73 = arith.constant 0 : index
    %157 = vector.load %arg13[%c0_72, %c0_73] : memref<1x32xf32, #tpu.memory_space<vmem>>, vector<1x32xf32>
    %158 = vector.broadcast %157 : vector<1x32xf32> to vector<8x32xf32>
    %159 = arith.addf %156, %158 : vector<8x32xf32>
    %160 = arith.addf %121, %159 : vector<8x32xf32>
    %c0_74 = arith.constant 0 : index
    %c0_75 = arith.constant 0 : index
    %161 = vector.load %arg14[%c0_74, %c0_75] : memref<8x32xf32, #tpu.memory_space<vmem>>, vector<8x32xf32>
    tpu.vector_store %arg14[%c0_74, %c0_75], %160 {strides = array<i32>} : memref<8x32xf32, #tpu.memory_space<vmem>>, vector<8x32xf32>,
    return
  }
  func.func @transform_0(%arg0: i32) -> (i32, i32) {
    %c0_i32 = arith.constant 0 : i32
    %c0_i32_0 = arith.constant 0 : i32
    return %arg0, %c0_i32 : i32, i32
  }
  func.func @transform_1(%arg0: i32) -> (i32, i32) {
    %c0_i32 = arith.constant 0 : i32
    %c0_i32_0 = arith.constant 0 : i32
    %c0_i32_1 = arith.constant 0 : i32
    return %c0_i32, %c0_i32_0 : i32, i32
  }
  func.func @transform_2(%arg0: i32) -> (i32, i32) {
    %c0_i32 = arith.constant 0 : i32
    %c0_i32_0 = arith.constant 0 : i32
    %c0_i32_1 = arith.constant 0 : i32
    return %c0_i32, %c0_i32_0 : i32, i32
  }
  func.func @transform_3(%arg0: i32) -> (i32, i32) {
    %c0_i32 = arith.constant 0 : i32
    %c0_i32_0 = arith.constant 0 : i32
    %c0_i32_1 = arith.constant 0 : i32
    return %c0_i32, %c0_i32_0 : i32, i32
  }
  func.func @transform_4(%arg0: i32) -> (i32, i32) {
    %c0_i32 = arith.constant 0 : i32
    %c0_i32_0 = arith.constant 0 : i32
    %c0_i32_1 = arith.constant 0 : i32
    return %c0_i32, %c0_i32_0 : i32, i32
  }
  func.func @transform_5(%arg0: i32) -> (i32, i32) {
    %c0_i32 = arith.constant 0 : i32
    %c0_i32_0 = arith.constant 0 : i32
    %c0_i32_1 = arith.constant 0 : i32
    return %c0_i32, %c0_i32_0 : i32, i32
  }
  func.func @transform_6(%arg0: i32) -> (i32, i32) {
    %c0_i32 = arith.constant 0 : i32
    %c0_i32_0 = arith.constant 0 : i32
    %c0_i32_1 = arith.constant 0 : i32
    return %c0_i32, %c0_i32_0 : i32, i32
  }
  func.func @transform_7(%arg0: i32) -> (i32, i32) {
    %c0_i32 = arith.constant 0 : i32
    %c0_i32_0 = arith.constant 0 : i32
    %c0_i32_1 = arith.constant 0 : i32
    return %c0_i32, %c0_i32_0 : i32, i32
  }
  func.func @transform_8(%arg0: i32) -> (i32, i32) {
    %c0_i32 = arith.constant 0 : i32
    %c0_i32_0 = arith.constant 0 : i32
    %c0_i32_1 = arith.constant 0 : i32
    return %c0_i32, %c0_i32_0 : i32, i32
  }
  func.func @transform_9(%arg0: i32) -> (i32, i32) {
    %c0_i32 = arith.constant 0 : i32
    %c0_i32_0 = arith.constant 0 : i32
    %c0_i32_1 = arith.constant 0 : i32
    return %c0_i32, %c0_i32_0 : i32, i32
  }
  func.func @transform_10(%arg0: i32) -> (i32, i32) {
    %c0_i32 = arith.constant 0 : i32
    %c0_i32_0 = arith.constant 0 : i32
    %c0_i32_1 = arith.constant 0 : i32
    return %c0_i32, %c0_i32_0 : i32, i32
  }
  func.func @transform_11(%arg0: i32) -> (i32, i32) {
    %c0_i32 = arith.constant 0 : i32
    %c0_i32_0 = arith.constant 0 : i32
    %c0_i32_1 = arith.constant 0 : i32
    return %c0_i32, %c0_i32_0 : i32, i32
  }
  func.func @transform_12(%arg0: i32) -> (i32, i32) {
    %c0_i32 = arith.constant 0 : i32
    %c0_i32_0 = arith.constant 0 : i32
    %c0_i32_1 = arith.constant 0 : i32
    return %c0_i32, %c0_i32_0 : i32, i32
  }
  func.func @transform_13(%arg0: i32) -> (i32, i32) {
    %c0_i32 = arith.constant 0 : i32
    %c0_i32_0 = arith.constant 0 : i32
    return %arg0, %c0_i32 : i32, i32
  }
  func.func @transform_14(%arg0: i32) -> (i32, i32, i32) {
    %c0_i32 = arith.constant 0 : i32
    %c0_i32_0 = arith.constant 0 : i32
    %c0_i32_1 = arith.constant 0 : i32
    return %arg0, %c0_i32, %c0_i32_0 : i32, i32, i32
  }
}

</mosaic_0001>

<bundles_post_ra>
// kernel: tpu_custom_call.1
= control target key start
LH: loop header
LB: loop body
LE: loop exit
PB: predicated region body
PF: predicated region fallthrough
CT: control target
= control target key end

     0   :  { %s1751_s0 = inlined_call_operand.vmem [shape: f32[16,32], index: 0, kind: input, shape index: {}]   ;;  %s1752_s1 = inlined_call_operand.vmem [shape: bf16[32,96], index: 1, kind: input, shape index: {}]   ;;  %s1753_s2 = inlined_call_operand.vmem [shape: f32[1,96], index: 2, kind: input, shape index: {}]   ;;  %s1754_s3 = inlined_call_operand.vmem [shape: bf16[32,32], index: 3, kind: input, shape index: {}]   ;;  %s1755_s4 = inlined_call_operand.vmem [shape: f32[1,32], index: 4, kind: input, shape index: {}]   ;;  %s1756_s5 = inlined_call_operand.vmem [shape: f32[1,32], index: 5, kind: input, shape index: {}]   ;;  %s1757_s6 = inlined_call_operand.vmem [shape: f32[1,32], index: 6, kind: input, shape index: {}]   ;;  %s1758_s7 = inlined_call_operand.vmem [shape: f32[1,32], index: 7, kind: input, shape index: {}]   ;;  %s1759_s8 = inlined_call_operand.vmem [shape: f32[1,32], index: 8, kind: input, shape index: {}]   ;;  %s1760_s9 = inlined_call_operand.hbm [shape: bf16[32,64], index: 9, kind: input, shape index: {}]   ;;  %s1761_s10 = inlined_call_operand.vmem [shape: f32[1,64], index: 10, kind: input, shape index: {}]   ;;  %s1762_s11 = inlined_call_operand.vmem [shape: bf16[64,32], index: 11, kind: input, shape index: {}]   ;;  %s1763_s12 = inlined_call_operand.vmem [shape: f32[1,32], index: 12, kind: input, shape index: {}]   ;;  %s1764_s13 = inlined_call_operand.hbm [shape: f32[16,32], index: 13, kind: output, shape index: {0}]   ;;  %s1765_s14 = inlined_call_operand.hbm [shape: f32[2,8,8], index: 14, kind: output, shape index: {1}]  }
   0x1   :  { %1767 = sst [smem:[#allocation13_spill]] %s1751_s0 }
   0x2   :  { %1768 = sst [smem:[#allocation14_spill]] %s1752_s1 }
   0x3   :  { %1769 = sst [smem:[#allocation15_spill]] %s1753_s2 }
   0x4   :  { %1770 = sst [smem:[#allocation16_spill]] %s1754_s3 }
   0x5   :  { %1771 = sst [smem:[#allocation17_spill]] %s1755_s4 }
   0x6   :  { %1772 = sst [smem:[#allocation18_spill]] %s1756_s5 }
   0x7   :  { %1773 = sst [smem:[#allocation19_spill]] %s1760_s9 }
   0x8   :  { %20 = vsyncpa [#allocation4], 0 }
   0x9   :  { %21 = vsyncpa [#allocation5], 0 }
   0xa   :  { %23 = vsyncpa [#allocation5 + $0x1], 0 }
   0xb   :  { %24 = vsyncpa [#allocation8], 0 }
   0xc   :  { %26 = vsyncpa [#allocation8 + $0x1], 0  ;;  %s1532_s29 = smov 0   ;;  %s1534_s30 = smov 0  }
   0xd   :  { %s1536_s15 = smov 0   ;;  %s1538_s16 = smov 0  }
   0xe LB: > { %s1553_s17 = sadd.s32 4294967295, %s1437_s16   ;;  %s1130_s18 = sadd.s32 4294967294, %s1437_s16   ;;  %s1437_s16 = sphi %s1538_s16, %s1789_s16   ;;  %s1433_s15 = sphi %s1536_s15, %s1788_s15   ;;  %s1429_s30 = sphi %s1534_s30, %s1787_s30   ;;  %s1425_s29 = sphi %s1532_s29, %s1786_s29  }
   0xf   : > { %s1557_s19 = sadd.s32 1, %s1437_s16   ;;  %s317_s20 = sadd.s32 1, %s1433_s15 }
  0x10   : > { %s314_s21 = ssub.s32 %s1437_s16, %s1557_s19  ;;  %p327_p0 = scmp.ne.s32.totalorder %s1433_s15, %s1429_s30 }
  0x11   : > { %p315_p1 = scmp.eq.s32.totalorder %s314_s21, 0  ;;  %p328_p2 = scmp.eq.s32.totalorder %s1553_s17, 1 }
  0x12   : > { %p333_p3 = scmp.ne.s32.totalorder %s1429_s30, %s1425_s29  ;;  %p334_p4 = scmp.eq.s32.totalorder %s1130_s18, 1 }
  0x13   : > { %s1568_s22 = scalar_select %p315_p1, %s1433_s15, %s317_s20  }
  0x14   : > { %p1570_p5 = por %p328_p2, %p327_p0  ;;  %p1574_p6 = por %p334_p4, %p333_p3 }
  0x15   : > { %1774 = sst [smem:[#allocation12_spill]] %s1568_s22  ;;  %p1131_p7 = scmp.ge.s32.totalorder %s1437_s16, 1 }
  0x16   : > { %p367_p8 = scmp.lt.s32.totalorder %s1437_s16, 3  ;;  %p1226_p9 = scmp.eq.s32.totalorder %s1553_s17, 0 }
  0x17   : > { %s1777_s9 = sld [smem:[#allocation19_spill]]  ;;  %s1439_s28 = smov [#allocation3]  }
  0x18   : > { %p368_p10 = pnand %p1131_p7, %p367_p8  ;;  %s404_s18 = sshll.u32 %s1439_s28, 4  ;;  %s405_s18 = int_to_ptr.vmem [resolvable:$true] %s404_s18 }
  0x19   : > { %s1440_s20 = smov 64   ;;  %s1441_s21 = smov 4  }
  0x1a   : > { %p1215_p11 = pneg %p368_p10  ;;  %436 = sbr.rel (%p368_p10) target bundleno = 1911 (0x777), region = 72 }
  0x1c   : > { %p1216_p12 = pnand %p1226_p9, %p1215_p11 }
  0x1d   : > { %s402_s27 = sshll.u32 %s1777_s9, 4  ;;  %s403_s27 = int_to_ptr.hbm [resolvable:$true] %s402_s27 }
  0x1e   : > { %1218 = dma.hbm_to_vmem [thread:$0]  (!%p1216_p12), %s403_s27, 256, %s405_s18, [#allocation4], %s1440_s20, %s1440_s20, %s1441_s21  }
  0x1f   : > { %1412 = dma.done.wait (%p1226_p9), [#allocation4], 256  }
  0x20   : > { %1414 = vsyncadd (%p1226_p9), [#allocation4], 4294967040  ;;  %p487_p13 = scmp.lt.s32.totalorder %s1553_s17, 1  ;;  %s1778_s0 = sld [smem:[#allocation13_spill]]  ;;  %vm493_vm0 = vcmask 261120   ;;  %v1442_v2 = vmov 32.0  }
  0x21   : > { %1287 = vrcp.f32 %v1442_v2  ;;  %s1779_s1 = sld [smem:[#allocation14_spill]]  ;;  %v1280_v28 = vld [vmem:[%s1757_s6] ss:$0 sm:$0xff]  ;;  %s1444_s27 = smov 120   ;;  %vm576_vm5 = vcmask 64512   ;;  %vm614_vm6 = vcmask 1043456  }
  0x22   : > { %s488_s25 = scalar_select %p487_p13, %s1553_s17, 1  ;;  %vm694_vm7 = vcmask 130112   ;;  %vm758_vm8 = vcmask 195712   ;;  %vm822_vm9 = vcmask 261312   ;;  %vm972_vm13 = vcmask 523264  }
  0x23   : > { %s1780_s5 = sld [smem:[#allocation18_spill]]  ;;  %s1445_s18 = smov 96  }
  0x24   : > { %s1138_s26 = sshll.u32 %s488_s25, 3  ;;  %s1781_s2 = sld [smem:[#allocation15_spill]] }
  0x25   : > { %s1446_s20 = smov 72   ;;  %s1447_s21 = smov 88  }
  0x26   : > { %s490_s22 = scalar_lea.vmem %s1778_s0, %s1138_s26  ;;  %s1448_s25 = smov 112  }
  0x27   : > { %v1595_v0 = vld [vmem:[%s490_s22] sm:$0xff]  ;;  %v1288_v3 = vpop.eup %1287  ;;  %v1198_v14 = vld [vmem:[%s1779_s1 + $0x8] sm:$0xff]  ;;  %s1443_s22 = smov 104   ;;  %s1449_s26 = smov 80  }
  0x28   : > { %v494_v1 = vsel %vm493_vm0, %v1595_v0, 0.0  ;;  %v498_v4 = vmul.f32 32.0, %v1288_v3  ;;  %vm502_vm1 = vweird.f32 %v1288_v3  ;;  %563 = vmatpush.bf16.msra.mxu0 %v1198_v14  ;;  %v1197_v15 = vld [vmem:[%s1779_s1] sm:$0xff]  ;;  %s1450_s28 = smov 64   ;;  %s1451_s9 = smov 56  }
  0x29   : > { %495 = vadd.xlane.f32.xlu0 %v494_v1  ;;  %v1279_v25 = vld [vmem:[%s1780_s5] ss:$0 sm:$0xff]  ;;  %s1782_s3 = sld [smem:[#allocation16_spill]] }
  0x2a   : > { %v499_v5 = vsub.f32 1.0, %v498_v4  ;;  %v1281_v32 = vld [vmem:[%s1781_s2] ss:$0 sm:$0xff]  ;;  %s1783_s4 = sld [smem:[#allocation17_spill]] }
  0x2c   : > { %v500_v6 = vmul.f32 %v1288_v3, %v499_v5  ;;  %564 = vmatpush.bf16.msra.mxu0 %v1197_v15 }
  0x2e   : > { %v501_v7 = vadd.f32 %v1288_v3, %v500_v6 }
  0x30   : > { %v1599_v8 = vsel %vm502_vm1, %v1288_v3, %v501_v7 }
  0x9c   : > { %v496_v9 = vpop.xlane.xlu0 %495 }
  0x9d   : > { %v504_v10 = vmul.f32 %v1599_v8, %v496_v9 }
  0x9f   : > { %v505_v11 = vsub.f32 %v1595_v0, %v504_v10 }
  0xa1   : > { %v506_v12 = vmul.f32 %v505_v11, %v505_v11 }
  0xa3   : > { %v507_v13 = vsel %vm493_vm0, %v506_v12, 0.0 }
  0xa4   : > { %508 = vadd.xlane.f32.xlu0 %v507_v13 }
 0x117   : > { %v509_v16 = vpop.xlane.xlu0 %508 }
 0x118   : > { %v510_v17 = vmul.f32 %v509_v16, %v1599_v8 }
 0x11a   : > { %v511_v18 = vadd.f32 1e-05, %v510_v17 }
 0x11c   : > { %1289 = vrsqrt.f32 %v511_v18  ;;  %vm518_vm3 = vweird.f32 %v511_v18 }
 0x122   : > { %v1290_v19 = vpop.eup %1289 }
 0x123   : > { %v513_v20 = vmul.f32 %v1290_v19, %v511_v18  ;;  %vm519_vm2 = vweird.f32 %v1290_v19 }
 0x124   : > { %vm520_vm4 = vmor %vm518_vm3, %vm519_vm2 }
 0x125   : > { %v514_v21 = vmul.f32 %v1290_v19, %v513_v20 }
 0x127   : > { %v515_v22 = vmul.f32 0.5, %v514_v21 }
 0x129   : > { %v516_v23 = vsub.f32 1.5, %v515_v22 }
 0x12b   : > { %v517_v24 = vmul.f32 %v1290_v19, %v516_v23 }
 0x12d   : > { %v521_v26 = vsel %vm520_vm4, %v1290_v19, %v517_v24 }
 0x12e   : > { %v522_v27 = vmul.f32 %v521_v26, %v505_v11 }
 0x130   : > { %v527_v29 = vmul.f32 %v1279_v25, %v522_v27 }
 0x132   : > { %v532_v30 = vadd.f32 %v1280_v28, %v527_v29 }
 0x134   : > { %v533_v31 = vpack.c.bf16 %v532_v30, %v532_v30 }
 0x136   : > { %1147 = vmatmul.msk.bf16.vlgmr.msra.gmra.mxu0 %vm493_vm0, %v533_v31 }
 0x1b3   : > { %v566_v33 = vpop.f32.mrf.mxu0 }
 0x1b4   : > { %v567_v34 = vadd.f32 %v1281_v32, %v566_v33 }
 0x1b6   : > { %v570_v35 = vpack.c.bf16 %v567_v34, %v567_v34 }
 0x1b8   : > { %v572_v36 = vunpack.c.l.b16 %v570_v35 }
 0x1ba   : > { %v573_v37 = vpack.c.b16 %v572_v36, %v572_v36 }
 0x1bb   : > { %v568_v38 = vpop.f32.mrf.mxu0 }
 0x1bc   : > { %760 = vrot.lane.b32.xlu0 %v573_v37, %s1443_s22  ;;  %632 = vrot.lane.b32.xlu2 %v573_v37, %s1444_s27  ;;  %s1452_s22 = smov 40   ;;  %s1453_s27 = smov 48  }
 0x1bd   : > { %574 = vrot.lane.b32.xlu1 %v573_v37, %s1445_s18  ;;  %s1645_s18 = sand.u32 1, %s1429_s30  }
 0x1be   : > { %s997_s1 = scalar_lea.sflag [#allocation8], %s1645_s18 }
 0x1c4   : > { %762 = vrot.lane.b32.xlu2 %v573_v37, %s1446_s20  ;;  %s1766_s20 = sshll.u32 %s1645_s18, 3 }
 0x1c5   : > { %634 = vrot.lane.b32.xlu1 %v573_v37, %s1447_s21  ;;  %s1651_s21 = scalar_lea.vmem [#allocation7], %s1766_s20  ;;  %s1193_s20 = sshll.u32 %s1553_s17, 3 }
 0x1c6   : > { %s1359_s17 = scalar_lea.hbm %s1765_s14, 16 }
 0x1cc   : > { %696 = vrot.lane.b32.xlu2 %v573_v37, %s1448_s25  ;;  %s1454_s25 = smov 8  }
 0x1cd   : > { %698 = vrot.lane.b32.xlu1 %v573_v37, %s1449_s26  ;;  %s1455_s26 = smov 24  }
 0x216   : > { %v633_v39 = vpop.permute.xlu2 %632 }
 0x21e   : > { %v763_v42 = vpop.permute.xlu2 %762 }
 0x21f   : > { %v768_v45 = vsel %vm576_vm5, %v763_v42, 0 }
 0x226   : > { %v697_v48 = vpop.permute.xlu2 %696 }
 0x22e   : > { %v761_v49 = vpop.permute.xlu0 %760 }
 0x22f   : > { %v575_v40 = vpop.permute.xlu1 %574 }
 0x230   : > { %v581_v41 = vsel %vm576_vm5, %v575_v40, 0 }
 0x231   : > { %590 = vmatpush.bf16.xpose.msra.mxu1 %v581_v41 }
 0x237   : > { %v635_v43 = vpop.permute.xlu1 %634 }
 0x238   : > { %1148 = vmatmul.msk.bf16.vlgmr.msra.gmra.mxu1 %vm576_vm5, %v570_v35  ;;  %v640_v44 = vsel %vm576_vm5, %v635_v43, 0 }
 0x239   : > { %649 = vmatpush.bf16.xpose.msra.mxu3 %v640_v44 }
 0x23f   : > { %v699_v46 = vpop.permute.xlu1 %698 }
 0x240   : > { %1150 = vmatmul.msk.bf16.vlgmr.msra.gmra.mxu3 %vm576_vm5, %v633_v39  ;;  %v704_v47 = vsel %vm576_vm5, %v699_v46, 0 }
 0x241   : > { %777 = vmatpush.bf16.xpose.msrb.mxu3 %v768_v45  ;;  %713 = vmatpush.bf16.xpose.msrb.mxu0 %v704_v47 }
 0x248   : > { %1152 = vmatmul.msk.bf16.vlgmr.msrb.gmra.mxu0 %vm576_vm5, %v697_v48 }
 0x250   : > { %1154 = vmatmul.msk.bf16.vlgmr.msrb.gmra.mxu3 %vm576_vm5, %v761_v49 }
 0x2b5   : > { %v592_v50 = vpop.f32.mrf.mxu1 }
 0x2b6   : > { %v596_v51 = vsel %vm576_vm5, %v592_v50, -inf }
 0x2b7   : > { %597 = vmax.xlane.f32.xlu1 %v596_v51 }
 0x2bd   : > { %v594_v52 = vpop.f32.mrf.mxu1 }
 0x2c3   : > { %v651_v53 = vpop.f32.mrf.mxu3 }
 0x2c4   : > { %v655_v54 = vsel %vm576_vm5, %v651_v53, -inf }
 0x2c5   : > { %656 = vmax.xlane.f32.xlu2 %v655_v54  ;;  %v715_v55 = vpop.f32.mrf.mxu0 }
 0x2c6   : > { %v719_v57 = vsel %vm576_vm5, %v715_v55, -inf }
 0x2cb   : > { %v653_v56 = vpop.f32.mrf.mxu3 }
 0x2cd   : > { %720 = vmax.xlane.f32.xlu2 %v719_v57  ;;  %v717_v58 = vpop.f32.mrf.mxu0 }
 0x2d3   : > { %v779_v59 = vpop.f32.mrf.mxu3 }
 0x2d4   : > { %v783_v60 = vsel %vm576_vm5, %v779_v59, -inf }
 0x2d5   : > { %784 = vmax.xlane.f32.xlu0 %v783_v60  ;;  %v1199_v60 = vld [vmem:[%s1782_s3] sm:$0xff] }
 0x2db   : > { %v781_v61 = vpop.f32.mrf.mxu3 }
 0x2e5   : > { %609 = vrot.lane.b32.xlu2 %v573_v37, %s1450_s28  ;;  %s1456_s28 = smov 16  }
 0x2e9   : > { %669 = vrot.lane.b32.xlu0 %v573_v37, %s1451_s9 }
 0x2ed   : > { %797 = vrot.lane.b32.xlu2 %v573_v37, %s1452_s22  ;;  %s1021_s22 = scalar_lea.hbm %s1765_s14, %s1193_s20 }
 0x2ee   : > { %s1025_s0 = sshll.u32 %s1021_s22, 4  ;;  %s1026_s0 = int_to_ptr.hbm [resolvable:$true] %s1025_s0 }
 0x2f1   : > { %733 = vrot.lane.b32.xlu0 %v573_v37, %s1453_s27  ;;  %s1023_s27 = sshll.u32 %s1651_s21, 4  ;;  %s1024_s27 = int_to_ptr.vmem [resolvable:$true] %s1023_s27 }
 0x32a   : > { %v598_v62 = vpop.xlane.xlu1 %597 }
 0x32b   : > { %v599_v63 = vsub.f32 %v592_v50, %v598_v62 }
 0x32d   : > { %v600_v1 = vmul.f32 1.442695, %v599_v63 }
 0x32f   : > { %1291 = vpow2.f32 %v600_v1 }
 0x335   : > { %v1292_v2 = vpop.eup %1291 }
 0x336   : > { %v602_v3 = vsel %vm576_vm5, %v1292_v2, 0.0 }
 0x337   : > { %603 = vadd.xlane.f32.xlu1 %v602_v3  ;;  %v1282_v3 = vld [vmem:[%s1783_s4] ss:$0 sm:$0xff] }
 0x338   : > { %v657_v4 = vpop.xlane.xlu2 %656 }
 0x339   : > { %v658_v5 = vsub.f32 %v651_v53, %v657_v4 }
 0x33b   : > { %v659_v6 = vmul.f32 1.442695, %v658_v5 }
 0x33d   : > { %1293 = vpow2.f32 %v659_v6 }
 0x340   : > { %v721_v7 = vpop.xlane.xlu2 %720 }
 0x341   : > { %v722_v15 = vsub.f32 %v715_v55, %v721_v7 }
 0x343   : > { %v1294_v9 = vpop.eup %1293  ;;  %v723_v17 = vmul.f32 1.442695, %v722_v15  ;;  %v1202_v15 = vld [vmem:[#allocation3 + $0x8] sm:$0xff] }
 0x344   : > { %v661_v10 = vsel %vm576_vm5, %v1294_v9, 0.0 }
 0x345   : > { %662 = vadd.xlane.f32.xlu1 %v661_v10 }
 0x348   : > { %v785_v11 = vpop.xlane.xlu0 %784  ;;  %v610_v12 = vpop.permute.xlu2 %609 }
 0x349   : > { %v786_v13 = vsub.f32 %v779_v59, %v785_v11  ;;  %v616_v14 = vsel %vm614_vm6, %v610_v12, 0  ;;  %v1200_v59 = vld [vmem:[%s1782_s3 + $0x8] sm:$0xff] }
 0x34a   : > { %625 = vmatpush.bf16.msra.mxu2 %v616_v14  ;;  %852 = vmatpush.bf16.msra.mxu0 %v1200_v59 }
 0x34b   : > { %v787_v16 = vmul.f32 1.442695, %v786_v13 }
 0x34d   : > { %1295 = vpow2.f32 %v787_v16  ;;  %v1201_v16 = vld [vmem:[#allocation3] sm:$0xff] }
 0x34e   : > { %1297 = vpow2.f32 %v723_v17  ;;  %853 = vmatpush.bf16.msra.mxu0 %v1199_v60 }
 0x350   : > { %v798_v29 = vpop.permute.xlu2 %797 }
 0x351   : > { %v803_v31 = vsel %vm614_vm6, %v798_v29, 0 }
 0x353   : > { %v1296_v18 = vpop.eup %1295 }
 0x354   : > { %v789_v19 = vsel %vm576_vm5, %v1296_v18, 0.0  ;;  %v1298_v20 = vpop.eup %1297 }
 0x355   : > { %790 = vadd.xlane.f32.xlu1 %v789_v19  ;;  %v725_v23 = vsel %vm576_vm5, %v1298_v20, 0.0  ;;  %v1205_v19 = vld [vmem:[%s1762_s11 + $0x10] sm:$0xff] }
 0x35b   : > { %v670_v21 = vpop.permute.xlu0 %669 }
 0x35c   : > { %v675_v22 = vsel %vm614_vm6, %v670_v21, 0  ;;  %v1204_v21 = vld [vmem:[%s1762_s11 + $0x8] sm:$0xff] }
 0x35d   : > { %684 = vmatpush.bf16.msrb.mxu2 %v675_v22  ;;  %726 = vadd.xlane.f32.xlu1 %v725_v23 }
 0x363   : > { %v734_v24 = vpop.permute.xlu0 %733 }
 0x364   : > { %v739_v25 = vsel %vm614_vm6, %v734_v24, 0 }
 0x365   : > { %748 = vmatpush.bf16.msrb.mxu1 %v739_v25 }
 0x369   : > { %927 = vmatpush.bf16.msra.mxu1 %v1202_v15 }
 0x36d   : > { %928 = vmatpush.bf16.msra.mxu1 %v1201_v16 }
 0x3aa   : > { %v604_v26 = vpop.xlane.xlu1 %603 }
 0x3ab   : > { %1299 = vrcp.f32 %v604_v26 }
 0x3b1   : > { %v1300_v27 = vpop.eup %1299 }
 0x3b2   : > { %v606_v28 = vmul.f32 %v1300_v27, %v1292_v2  ;;  %v1283_v27 = vld [vmem:[%s1758_s7] ss:$0 sm:$0xff] }
 0x3b4   : > { %v608_v30 = vpack.c.bf16 %v606_v28, %v606_v28  ;;  %v607_v43 = vmul.f32 0.25, %v606_v28 }
 0x3b6   : > { %1149 = vmatmul.msk.bf16.vlgmr.msra.gmra.mxu2 %vm576_vm5, %v608_v30  ;;  %v1284_v30 = vld [vmem:[%s1759_s8] ss:$0 sm:$0xff] }
 0x3b7   : > { %812 = vmatpush.bf16.msra.mxu2 %v803_v31 }
 0x3b8   : > { %v663_v32 = vpop.xlane.xlu1 %662 }
 0x3b9   : > { %1301 = vrcp.f32 %v663_v32 }
 0x3bf   : > { %v1302_v33 = vpop.eup %1301 }
 0x3c0   : > { %v665_v34 = vmul.f32 %v1302_v33, %v1294_v9 }
 0x3c2   : > { %v668_v35 = vpack.c.bf16 %v665_v34, %v665_v34  ;;  %v666_v41 = vmul.f32 0.25, %v665_v34  ;;  %v1203_v34 = vld [vmem:[%s1762_s11] sm:$0xff] }
 0x3c4   : > { %v667_v45 = vadd.f32 %v666_v41, %v607_v43 }
 0x3c6   : > { %1151 = vmatmul.msk.bf16.vlgmr.msrb.gmra.mxu2 %vm576_vm5, %v668_v35  ;;  %v1285_v35 = vld [vmem:[%s1761_s10] ss:$0 sm:$0xff] }
 0x3c8   : > { %v791_v36 = vpop.xlane.xlu1 %790 }
 0x3c9   : > { %1303 = vrcp.f32 %v791_v36 }
 0x3cf   : > { %v1304_v37 = vpop.eup %1303 }
 0x3d0   : > { %v793_v38 = vmul.f32 %v1304_v37, %v1296_v18  ;;  %v727_v39 = vpop.xlane.xlu1 %726 }
 0x3d1   : > { %1305 = vrcp.f32 %v727_v39 }
 0x3d2   : > { %v796_v40 = vpack.c.bf16 %v793_v38, %v793_v38  ;;  %v794_v48 = vmul.f32 0.25, %v793_v38 }
 0x3d6   : > { %1155 = vmatmul.msk.bf16.vlgmr.msra.gmra.mxu2 %vm576_vm5, %v796_v40 }
 0x3d7   : > { %v1306_v42 = vpop.eup %1305 }
 0x3d8   : > { %v729_v44 = vmul.f32 %v1306_v42, %v1298_v20 }
 0x3da   : > { %v730_v46 = vmul.f32 0.25, %v729_v44  ;;  %v732_v47 = vpack.c.bf16 %v729_v44, %v729_v44 }
 0x3dc   : > { %v731_v49 = vadd.f32 %v730_v46, %v667_v45  ;;  %1153 = vmatmul.msk.bf16.vlgmr.msrb.gmra.mxu1 %vm576_vm5, %v732_v47 }
 0x3de   : > { %v795_v50 = vadd.f32 %v794_v48, %v731_v49 }
 0x3e0   : > { %824 = vst.msk [vmem:[%s1651_s21] sm:$0xff] %vm576_vm5, %v795_v50 }
 0x439   : > { %v627_v51 = vpop.f32.mrf.mxu2 }
 0x43a   : > { %631 = vst.msk [vmem:[#allocation2] sm:$0xff] %vm576_vm5, %v627_v51 }
 0x441   : > { %v629_v52 = vpop.f32.mrf.mxu2 }
 0x449   : > { %v686_v53 = vpop.f32.mrf.mxu2 }
 0x44a   : > { %691 = vrot.lane.b32.xlu1 %v686_v53, %s1454_s25  ;;  %s1353_s25 = sshra.s32 %s1026_s0, 4  ;;  %s1354_s25 = int_to_ptr.hbm [resolvable:$true] %s1353_s25 }
 0x44b   : > { %p1360_p3 = scmp.lt.s32.totalorder %s1354_s25, %s1765_s14 }
 0x451   : > { %v688_v54 = vpop.f32.mrf.mxu2 }
 0x459   : > { %v750_v55 = vpop.f32.mrf.mxu1  ;;  %v814_v56 = vpop.f32.mrf.mxu2 }
 0x45a   : > { %819 = vrot.lane.b32.xlu0 %v814_v56, %s1455_s26  ;;  %755 = vrot.lane.b32.xlu2 %v750_v55, %s1456_s28  ;;  %s1355_s26 = scalar_lea.hbm %s1354_s25, 8 }
 0x45b   : > { %p1356_p0 = scmp.ne.s32.totalorder %s1354_s25, %s1355_s26  ;;  %p1361_p4 = scmp.lt.s32.totalorder %s1359_s17, %s1355_s26 }
 0x45d   : > { %p1357_p1 = pnand %p1356_p0, %p1570_p5  ;;  %p1362_p7 = por %p1361_p4, %p1360_p3 }
 0x45f   : > { %p1358_p2 = pneg %p1357_p1 }
 0x461   : > { %v752_v57 = vpop.f32.mrf.mxu1  ;;  %v816_v58 = vpop.f32.mrf.mxu2  ;;  %p1363_p8 = pnand %p1362_p7, %p1358_p2 }
 0x4b4   : > { %v756_v62 = vpop.permute.xlu2 %755 }
 0x4bc   : > { %v692_v61 = vpop.permute.xlu1 %691 }
 0x4bd   : > { %695 = vst.msk [vmem:[#allocation2] sm:$0xff] %vm694_vm7, %v692_v61 }
 0x4be   : > { %759 = vst.msk [vmem:[#allocation2] sm:$0xff] %vm758_vm8, %v756_v62 }
 0x4cc   : > { %v820_v63 = vpop.permute.xlu0 %819 }
 0x4cd   : > { %823 = vst.msk [vmem:[#allocation2] sm:$0xff] %vm822_vm9, %v820_v63 }
 0x4d4   : > { %v825_v1 = vld [vmem:[#allocation2] sm:$0xff] }
 0x4d5   : > { %v826_v2 = vpack.c.bf16 %v825_v1, %v825_v1 }
 0x4d7   : > { %1164 = vmatmul.msk.bf16.vlgmr.msra.gmra.mxu0 %vm493_vm0, %v826_v2 }
 0x554   : > { %v855_v4 = vpop.f32.mrf.mxu0 }
 0x555   : > { %v859_v5 = vadd.f32 %v855_v4, %v1595_v0  ;;  %v1206_v0 = vld [vmem:[%s1762_s11 + $0x18] sm:$0xff] }
 0x556   : > { %980 = vmatpush.bf16.msra.mxu3 %v1206_v0 }
 0x557   : > { %v1667_v6 = vadd.f32 %v1282_v3, %v859_v5 }
 0x559   : > { %v865_v7 = vsel %vm493_vm0, %v1667_v6, 0.0 }
 0x55a   : > { %866 = vadd.xlane.f32.xlu2 %v865_v7  ;;  %981 = vmatpush.bf16.msra.mxu3 %v1205_v19 }
 0x55c   : > { %v857_v9 = vpop.f32.mrf.mxu0 }
 0x55e   : > { %982 = vmatpush.bf16.msra.mxu3 %v1204_v21 }
 0x562   : > { %983 = vmatpush.bf16.msra.mxu3 %v1203_v34 }
 0x5cd   : > { %v867_v10 = vpop.xlane.xlu2 %866 }
 0x5ce   : > { %v868_v11 = vmul.f32 %v867_v10, %v1599_v8 }
 0x5d0   : > { %v869_v12 = vsub.f32 %v1667_v6, %v868_v11 }
 0x5d2   : > { %v870_v13 = vmul.f32 %v869_v12, %v869_v12 }
 0x5d4   : > { %v871_v14 = vsel %vm493_vm0, %v870_v13, 0.0 }
 0x5d5   : > { %872 = vadd.xlane.f32.xlu0 %v871_v14 }
 0x648   : > { %v873_v17 = vpop.xlane.xlu0 %872 }
 0x649   : > { %v874_v18 = vmul.f32 %v873_v17, %v1599_v8 }
 0x64b   : > { %v875_v20 = vadd.f32 1e-05, %v874_v18 }
 0x64d   : > { %1307 = vrsqrt.f32 %v875_v20  ;;  %vm882_vm11 = vweird.f32 %v875_v20 }
 0x653   : > { %v1308_v22 = vpop.eup %1307 }
 0x654   : > { %v877_v23 = vmul.f32 %v1308_v22, %v875_v20  ;;  %vm883_vm10 = vweird.f32 %v1308_v22 }
 0x655   : > { %vm884_vm12 = vmor %vm882_vm11, %vm883_vm10 }
 0x656   : > { %v878_v24 = vmul.f32 %v1308_v22, %v877_v23 }
 0x658   : > { %v879_v25 = vmul.f32 0.5, %v878_v24 }
 0x65a   : > { %v880_v26 = vsub.f32 1.5, %v879_v25 }
 0x65c   : > { %v881_v8 = vmul.f32 %v1308_v22, %v880_v26 }
 0x65e   : > { %v885_v28 = vsel %vm884_vm12, %v1308_v22, %v881_v8 }
 0x65f   : > { %v886_v29 = vmul.f32 %v885_v28, %v869_v12 }
 0x661   : > { %v891_v31 = vmul.f32 %v1283_v27, %v886_v29 }
 0x663   : > { %v896_v32 = vadd.f32 %v1284_v30, %v891_v31 }
 0x665   : > { %v897_v33 = vpack.c.bf16 %v896_v32, %v896_v32 }
 0x667   : > { %1173 = vmatmul.msk.bf16.vlgmr.msra.gmra.mxu1 %vm493_vm0, %v897_v33 }
 0x6e4   : > { %v930_v36 = vpop.f32.mrf.mxu1 }
 0x6e5   : > { %v931_v37 = vadd.f32 %v1285_v35, %v930_v36 }
 0x6e7   : > { %v934_v38 = vmax.f32 %v931_v37, 0.0 }
 0x6e9   : > { %v935_v39 = vpack.c.bf16 %v934_v38, %v934_v38 }
 0x6eb   : > { %1190 = vmatmul.msk.bf16.vlgmr.msra.gmra.mxu3 %vm972_vm13, %v935_v39 }
 0x6ec   : > { %v932_v40 = vpop.f32.mrf.mxu1 }
 0x6ed   : > { %1366 = shalt.err (!%p1363_p8)
}
 0x6ee   : > { %1212 = dma.vmem_to_hbm [thread:$0]  (%p1570_p5), %s1024_s27, 128, %s1026_s0, %s997_s1   ;;  %v1286_v41 = vld [vmem:[%s1763_s12] ss:$0 sm:$0xff] }
 0x6ef   : > { %s1007_s3 = scalar_lea.hbm %s1764_s13, %s1193_s20  ;;  %s1784_s4 = sshll.u32 %s1645_s18, 3 }
 0x6f0   : > { %s479_s5 = scalar_lea.vmem [#allocation6], %s1784_s4  ;;  %s1011_s25 = sshll.u32 %s1007_s3, 4  ;;  %s1012_s25 = int_to_ptr.hbm [resolvable:$true] %s1011_s25 }
 0x6f1   : > { %s1009_s22 = sshll.u32 %s479_s5, 4  ;;  %s992_s0 = scalar_lea.sflag [#allocation5], %s1645_s18  ;;  %s1010_s22 = int_to_ptr.vmem [resolvable:$true] %s1009_s22 }
 0x6f2   : > { %s1381_s1 = sshra.s32 %s1012_s25, 4  ;;  %s1387_s17 = scalar_lea.hbm %s1764_s13, 16  ;;  %s1382_s1 = int_to_ptr.hbm [resolvable:$true] %s1381_s1 }
 0x6f3   : > { %s1383_s27 = scalar_lea.hbm %s1382_s1, 8  ;;  %p1388_p12 = scmp.lt.s32.totalorder %s1382_s1, %s1764_s13 }
 0x6f4   : > { %p1384_p9 = scmp.ne.s32.totalorder %s1382_s1, %s1383_s27  ;;  %p1389_p13 = scmp.lt.s32.totalorder %s1387_s17, %s1383_s27 }
 0x6f6   : > { %p1385_p10 = pnand %p1384_p9, %p1570_p5  ;;  %p1390_p0 = por %p1389_p13, %p1388_p12 }
 0x6f8   : > { %p1386_p11 = pneg %p1385_p10 }
 0x6fa   : > { %p1391_p1 = pnand %p1390_p0, %p1386_p11 }
 0x76e   : > { %v985_v42 = vpop.f32.mrf.mxu3 }
 0x76f   : > { %v986_v43 = vadd.f32 %v1286_v41, %v985_v42 }
 0x771   : > { %v989_v44 = vadd.f32 %v986_v43, %v1667_v6 }
 0x773   : > { %990 = vst.msk [vmem:[%s479_s5] sm:$0xff] %vm493_vm0, %v989_v44 }
 0x774   : > { %1394 = shalt.err (!%p1391_p1)
}
 0x775   : > { %1211 = dma.vmem_to_hbm [thread:$0]  (%p1570_p5), %s1010_s22, 128, %s1012_s25, %s992_s0  }
 0x776   : > { %v987_v45 = vpop.f32.mrf.mxu3 }
 0x777 PF: > { %p1228_p2 = scmp.ge.s32.totalorder %s1437_s16, 2  ;;  %s1037_s18 = sand.u32 1, %s1425_s29  }
 0x778   : > { %s1038_s9 = scalar_lea.sflag [#allocation5], %s1037_s18 }
 0x779   : > { %p1220_p3 = pnand %p1228_p2, %p1574_p6 }
 0x77b   : > { %p1221_p4 = pneg %p1220_p3 }
 0x77d   : > { %1416 = dma.done.wait (%p1221_p4), %s1038_s9, 128  }
 0x77e   : > { %1418 = vsyncadd (%p1221_p4), %s1038_s9, 4294967168  ;;  %s1048_s2 = scalar_lea.sflag [#allocation8], %s1037_s18 }
 0x77f   : > { %1420 = dma.done.wait (%p1221_p4), %s1048_s2, 128  }
 0x780   : > { %1422 = vsyncadd (%p1221_p4), %s1048_s2, 4294967168  ;;  %s1785_s23 = sld [smem:[#allocation12_spill]]  ;;  %p29_p5 = scmp.ge.s32.totalorder %s1557_s19, 4  }
 0x781   : > { %s1786_s29 = smov %s1429_s30  ;;  %s1787_s30 = smov %s1433_s15 }
 0x782   : > { %s1789_s16 = smov %s1557_s19  ;;  %31 = sbr.rel (!%p29_p5) target bundleno = 14 (0xe), region = 129 }
 0x786   : > { %s1788_s15 = smov %s1785_s23 }
 0x787   :  { %1054 = vsyncpa [#allocation4], 1 }
 0x788   :  { %1056 = vsyncpa [#allocation4 + $0x1], 1 }
 0x789   :  { %1057 = vsyncpa [#allocation5], 1 }
 0x78a   :  { %1059 = vsyncpa [#allocation5 + $0x1], 1 }
 0x78b   :  { %1060 = vsyncpa [#allocation8], 1 }
 0x78c   :  { %1062 = vsyncpa [#allocation8 + $0x1], 1 }

</bundles_post_ra>
